<compile_context>
chip_gen: v7x
topology: tpu7x:2x2x1
jax: 0.10.0
libtpu: 0.0.40
codegen_flags: <defaults>
</compile_context>

<pallas_src>
import functools

import jax
import jax.numpy as jnp
from jax.experimental import pallas as pl
from jax.experimental.pallas import tpu as pltpu

LAYERS = [2, 50, 50, 50, 1]
H = 50          # real hidden width
PAD = 128       # padded hidden width (lane dim): lanes 0:50 sample A, 50:100 sample B
D_IN = 2        # real input features
K_PACK = 16     # packed input width: lanes 0:2 sample A, lanes 8:10 sample B
OUT_PAD = 8     # packed output width: col 0 = sample A, col 1 = sample B

_STEP_ROWS = 32       # ~0.35us grid-step overhead expressed in packed-row compute
_ODD_GRID_PENALTY = 0.5   # weight for odd-grid imbalance (v7x has 2 TensorCores)


def _pinn_kernel(x_ref, w1_ref, b1_ref, w2_ref, b2_ref,
                 w3_ref, b3_ref, w4_ref, b4_ref, o_ref, *, act_dtype):
    """Fused 4-layer MLP; every row of x_ref carries TWO independent samples
    (block-diagonal packed weights keep them from mixing)."""
    x = x_ref[...]                                                 # (TM, 16) f32

    z = jnp.dot(x, w1_ref[...],
                preferred_element_type=jnp.float32) + b1_ref[...]  # (TM, 128)
    h = jnp.tanh(z.astype(act_dtype))
    z = jnp.dot(h, w2_ref[...].astype(act_dtype),
                preferred_element_type=jnp.float32) + b2_ref[...]
    h = jnp.tanh(z.astype(act_dtype))
    z = jnp.dot(h, w3_ref[...].astype(act_dtype),
                preferred_element_type=jnp.float32) + b3_ref[...]
    h = jnp.tanh(z.astype(act_dtype))
    y = jnp.dot(h, w4_ref[...].astype(act_dtype),
                preferred_element_type=jnp.float32) + b4_ref[...]  # (TM, 8)

    o_ref[...] = y.astype(o_ref.dtype)


def _choose_tm(rows):
    """Row tile over packed rows.  Cost model: total padded rows processed
    + per-grid-step overhead + penalty for odd grids (v7x 2-TC imbalance)."""
    if rows <= 128:
        return 128
    best_tm, best_cost = 128, None
    for tm in (4096, 2048, 1024, 512, 256, 128):
        grid = -(-rows // tm)               # ceil
        if grid < 2:                        # keep >= 2 steps so both v7x TCs get work
            continue
        cost = (grid * tm                   # rows actually computed (incl. padding)
                + _STEP_ROWS * grid         # pipeline step overhead
                + _ODD_GRID_PENALTY * (grid % 2) * tm)   # odd-grid core imbalance
        if best_cost is None or cost < best_cost:
            best_cost, best_tm = cost, tm
    return best_tm


def _pack_weights(params):
    """Build the 2-samples-per-row block-diagonal padded weights (all f32).

    Zero-padded lanes (100:128) and zero input lanes stay exactly 0 through
    every layer since tanh(0)=0 and their weight rows/cols and bias lanes are 0.
    """
    (w1, b1), (w2, b2), (w3, b3), (w4, b4) = [
        (jnp.asarray(w, jnp.float32), jnp.asarray(b, jnp.float32)) for w, b in params
    ]

    w1t = w1.T                                              # (2, 50)
    w1_p = (jnp.zeros((K_PACK, PAD), jnp.float32)
            .at[0:D_IN, 0:H].set(w1t)                       # sample A block
            .at[8:8 + D_IN, H:2 * H].set(w1t))              # sample B block
    b1_p = (jnp.zeros((1, PAD), jnp.float32)
            .at[0, 0:H].set(b1).at[0, H:2 * H].set(b1))

    def hidden(w, b):
        wt = w.T                                            # (50, 50)
        wp = (jnp.zeros((PAD, PAD), jnp.float32)
              .at[0:H, 0:H].set(wt)
              .at[H:2 * H, H:2 * H].set(wt))
        bp = (jnp.zeros((1, PAD), jnp.float32)
              .at[0, 0:H].set(b).at[0, H:2 * H].set(b))
        return wp, bp

    w2_p, b2_p = hidden(w2, b2)
    w3_p, b3_p = hidden(w3, b3)

    w4t = w4.T                                              # (50, 1)
    w4_p = (jnp.zeros((PAD, OUT_PAD), jnp.float32)
            .at[0:H, 0].set(w4t[:, 0])                      # col 0 -> sample A
            .at[H:2 * H, 1].set(w4t[:, 0]))                 # col 1 -> sample B
    b4_p = (jnp.zeros((1, OUT_PAD), jnp.float32)
            .at[0, 0].set(b4[0]).at[0, 1].set(b4[0]))

    return w1_p, b1_p, w2_p, b2_p, w3_p, b3_p, w4_p, b4_p


@functools.partial(jax.jit, static_argnames=("use_bf16",))
def pinn_forward(x, params, use_bf16=False):
    """x: (N, 2) float32.  params: list of (W, b) with W: (out, in), b: (out,).

    use_bf16=True enables bf16 tanh / bf16 MXU inputs (v6e/v7x only; relaxes
    the f32 accuracy).  Default f32 path is exact and is what v5e should use.
    """
    n, d_in = x.shape
    assert d_in == LAYERS[0] and 2 * H <= PAD and d_in <= 8

    # ---- pack two samples per row: row r holds samples 2r (lanes 0:2) and
    # ---- 2r+1 (lanes 8:10); pad packed-row count to a TM multiple ----------
    rows = (n + 1) // 2
    tm = _choose_tm(rows)
    rows_pad = ((rows + tm - 1) // tm) * tm

    x_f = jnp.zeros((rows_pad * 2, d_in), jnp.float32).at[:n].set(
        x.astype(jnp.float32))
    x_pack = (jnp.zeros((rows_pad, K_PACK), jnp.float32)
              .at[:, 0:d_in].set(x_f[0::2])
              .at[:, 8:8 + d_in].set(x_f[1::2]))

    w1_p, b1_p, w2_p, b2_p, w3_p, b3_p, w4_p, b4_p = _pack_weights(params)

    act_dtype = jnp.bfloat16 if use_bf16 else jnp.float32
    kernel = functools.partial(_pinn_kernel, act_dtype=act_dtype)

    grid = (rows_pad // tm,)
    hid_w_spec = pl.BlockSpec((PAD, PAD), lambda i: (0, 0))
    hid_b_spec = pl.BlockSpec((1, PAD), lambda i: (0, 0))

    out = pl.pallas_call(
        kernel,
        out_shape=jax.ShapeDtypeStruct((rows_pad, OUT_PAD), jnp.float32),
        grid_spec=pltpu.PrefetchScalarGridSpec(
            num_scalar_prefetch=0,
            grid=grid,
            in_specs=[
                pl.BlockSpec((tm, K_PACK), lambda i: (i, 0)),     # packed x tile
                pl.BlockSpec((K_PACK, PAD), lambda i: (0, 0)),    # W1 (two-block)
                hid_b_spec,                                       # b1
                hid_w_spec, hid_b_spec,                           # W2, b2 (block-diag)
                hid_w_spec, hid_b_spec,                           # W3, b3 (block-diag)
                pl.BlockSpec((PAD, OUT_PAD), lambda i: (0, 0)),   # W4 (2 head cols)
                pl.BlockSpec((1, OUT_PAD), lambda i: (0, 0)),     # b4
            ],
            out_specs=pl.BlockSpec((tm, OUT_PAD), lambda i: (i, 0)),
        ),
        compiler_params=pltpu.CompilerParams(
            dimension_semantics=("parallel",),
            # Peak VMEM (tiles + weights + scratch) stays well under 32 MiB
            # even at TM=4096 -> fits every generation incl. v7x's 64 MiB.
            vmem_limit_bytes=32 * 1024 * 1024,
        ),
    )(x_pack, w1_p, b1_p, w2_p, b2_p, w3_p, b3_p, w4_p, b4_p)

    # de-interleave the two packed output columns -> (2*rows_pad, 1), keep n rows
    return out[:, :2].reshape(rows_pad * 2, 1)[:n]


def init_params(key):
    """Deterministic init mimicking nn.Linear default: U(-1/sqrt(fan_in), +)."""
    params = []
    for i in range(len(LAYERS) - 1):
        fan_in, fan_out = LAYERS[i], LAYERS[i + 1]
        key, kw, kb = jax.random.split(key, 3)
        bound = 1.0 / jnp.sqrt(float(fan_in))
        w = jax.random.uniform(kw, (fan_out, fan_in), jnp.float32, -bound, bound)
        b = jax.random.uniform(kb, (fan_out,), jnp.float32, -bound, bound)
        params.append((w, b))
    return params


def pinn_reference(x, params):
    """Pure-JAX reference of the PyTorch forward (full f32 matmul precision)."""
    h = x.astype(jnp.float32)
    n_layers = len(params)
    for i, (w, b) in enumerate(params):
        h = jnp.dot(h, w.T, precision=jax.lax.Precision.HIGHEST) + b
        if i < n_layers - 1:
            h = jnp.tanh(h)
    return h


if __name__ == "__main__":
    key = jax.random.PRNGKey(0)
    params = init_params(key)

    # even and odd batch sizes (odd case exercises the 2-sample packing padding)
    for n in (256, 131):
        key, kx = jax.random.split(key)
        pts = jax.random.uniform(kx, (n, 2), jnp.float32, -1.0, 1.0)  # (t, x) points
        y = jax.block_until_ready(pinn_forward(pts, params))
        y_ref = pinn_reference(pts, params)
        assert y.shape == (n, 1), y.shape
        assert jnp.allclose(y, y_ref, atol=1e-5, rtol=1e-5), float(
            jnp.max(jnp.abs(y - y_ref)))

    print("KERNEL_OK")
</pallas_src>

<mosaic_0001>
module attributes {stable_mosaic.version = 11 : i64} {
  func.func @_pinn_kernel(%arg0: i32, %arg1: memref<128x16xf32, #tpu.memory_space<vmem>>, %arg2: memref<16x128xf32, #tpu.memory_space<vmem>>, %arg3: memref<1x128xf32, #tpu.memory_space<vmem>>, %arg4: memref<128x128xf32, #tpu.memory_space<vmem>>, %arg5: memref<1x128xf32, #tpu.memory_space<vmem>>, %arg6: memref<128x128xf32, #tpu.memory_space<vmem>>, %arg7: memref<1x128xf32, #tpu.memory_space<vmem>>, %arg8: memref<128x8xf32, #tpu.memory_space<vmem>>, %arg9: memref<1x8xf32, #tpu.memory_space<vmem>>, %arg10: memref<128x8xf32, #tpu.memory_space<vmem>>) attributes {dimension_semantics = [#tpu.dimension_semantics<parallel>], iteration_bounds = array<i64: 1>, scalar_prefetch = 0 : i64, scratch_operands = 0 : i64, tpu.core_type = #tpu.core_type<tc>, window_params = [{transform_indices = @transform_0, window_bounds = array<i64: 128, 16>}, {pipeline_mode = #tpu.pipeline_mode<synchronous>, transform_indices = @transform_1, window_bounds = array<i64: 16, 128>}, {pipeline_mode = #tpu.pipeline_mode<synchronous>, transform_indices = @transform_2, window_bounds = array<i64: 1, 128>}, {pipeline_mode = #tpu.pipeline_mode<synchronous>, transform_indices = @transform_3, window_bounds = array<i64: 128, 128>}, {pipeline_mode = #tpu.pipeline_mode<synchronous>, transform_indices = @transform_4, window_bounds = array<i64: 1, 128>}, {pipeline_mode = #tpu.pipeline_mode<synchronous>, transform_indices = @transform_5, window_bounds = array<i64: 128, 128>}, {pipeline_mode = #tpu.pipeline_mode<synchronous>, transform_indices = @transform_6, window_bounds = array<i64: 1, 128>}, {pipeline_mode = #tpu.pipeline_mode<synchronous>, transform_indices = @transform_7, window_bounds = array<i64: 128, 8>}, {pipeline_mode = #tpu.pipeline_mode<synchronous>, transform_indices = @transform_8, window_bounds = array<i64: 1, 8>}, {transform_indices = @transform_9, window_bounds = array<i64: 128, 8>}]} {
    %c0 = arith.constant 0 : index
    %c0_0 = arith.constant 0 : index
    %0 = vector.load %arg1[%c0, %c0_0] : memref<128x16xf32, #tpu.memory_space<vmem>>, vector<128x16xf32>
    %c0_1 = arith.constant 0 : index
    %c0_2 = arith.constant 0 : index
    %1 = vector.load %arg2[%c0_1, %c0_2] : memref<16x128xf32, #tpu.memory_space<vmem>>, vector<16x128xf32>
    %cst = arith.constant dense<0.000000e+00> : vector<128x128xf32>
    %2 = tpu.matmul %0, %1, %cst {dimension_numbers = #tpu.dot_dimension_numbers<[1], [0], [0], [1], [0, 0, 1, 1], [], []>} : vector<128x16xf32>, vector<16x128xf32>, vector<128x128xf32> -> vector<128x128xf32>
    %c0_3 = arith.constant 0 : index
    %c0_4 = arith.constant 0 : index
    %3 = vector.load %arg3[%c0_3, %c0_4] : memref<1x128xf32, #tpu.memory_space<vmem>>, vector<1x128xf32>
    %4 = vector.broadcast %3 : vector<1x128xf32> to vector<128x128xf32>
    %5 = arith.addf %2, %4 : vector<128x128xf32>
    %6 = math.tanh %5 : vector<128x128xf32>
    %c0_5 = arith.constant 0 : index
    %c0_6 = arith.constant 0 : index
    %7 = vector.load %arg4[%c0_5, %c0_6] : memref<128x128xf32, #tpu.memory_space<vmem>>, vector<128x128xf32>
    %cst_7 = arith.constant dense<0.000000e+00> : vector<128x128xf32>
    %8 = tpu.matmul %6, %7, %cst_7 {dimension_numbers = #tpu.dot_dimension_numbers<[1], [0], [0], [1], [0, 0, 1, 1], [], []>} : vector<128x128xf32>, vector<128x128xf32>, vector<128x128xf32> -> vector<128x128xf32>
    %c0_8 = arith.constant 0 : index
    %c0_9 = arith.constant 0 : index
    %9 = vector.load %arg5[%c0_8, %c0_9] : memref<1x128xf32, #tpu.memory_space<vmem>>, vector<1x128xf32>
    %10 = vector.broadcast %9 : vector<1x128xf32> to vector<128x128xf32>
    %11 = arith.addf %8, %10 : vector<128x128xf32>
    %12 = math.tanh %11 : vector<128x128xf32>
    %c0_10 = arith.constant 0 : index
    %c0_11 = arith.constant 0 : index
    %13 = vector.load %arg6[%c0_10, %c0_11] : memref<128x128xf32, #tpu.memory_space<vmem>>, vector<128x128xf32>
    %cst_12 = arith.constant dense<0.000000e+00> : vector<128x128xf32>
    %14 = tpu.matmul %12, %13, %cst_12 {dimension_numbers = #tpu.dot_dimension_numbers<[1], [0], [0], [1], [0, 0, 1, 1], [], []>} : vector<128x128xf32>, vector<128x128xf32>, vector<128x128xf32> -> vector<128x128xf32>
    %c0_13 = arith.constant 0 : index
    %c0_14 = arith.constant 0 : index
    %15 = vector.load %arg7[%c0_13, %c0_14] : memref<1x128xf32, #tpu.memory_space<vmem>>, vector<1x128xf32>
    %16 = vector.broadcast %15 : vector<1x128xf32> to vector<128x128xf32>
    %17 = arith.addf %14, %16 : vector<128x128xf32>
    %18 = math.tanh %17 : vector<128x128xf32>
    %c0_15 = arith.constant 0 : index
    %c0_16 = arith.constant 0 : index
    %19 = vector.load %arg8[%c0_15, %c0_16] : memref<128x8xf32, #tpu.memory_space<vmem>>, vector<128x8xf32>
    %cst_17 = arith.constant dense<0.000000e+00> : vector<128x8xf32>
    %20 = tpu.matmul %18, %19, %cst_17 {dimension_numbers = #tpu.dot_dimension_numbers<[1], [0], [0], [1], [0, 0, 1, 1], [], []>} : vector<128x128xf32>, vector<128x8xf32>, vector<128x8xf32> -> vector<128x8xf32>
    %c0_18 = arith.constant 0 : index
    %c0_19 = arith.constant 0 : index
    %21 = vector.load %arg9[%c0_18, %c0_19] : memref<1x8xf32, #tpu.memory_space<vmem>>, vector<1x8xf32>
    %22 = vector.broadcast %21 : vector<1x8xf32> to vector<128x8xf32>
    %23 = arith.addf %20, %22 : vector<128x8xf32>
    %c0_20 = arith.constant 0 : index
    %c0_21 = arith.constant 0 : index
    %24 = vector.load %arg10[%c0_20, %c0_21] : memref<128x8xf32, #tpu.memory_space<vmem>>, vector<128x8xf32>
    tpu.vector_store %arg10[%c0_20, %c0_21], %23 {strides = array<i32>} : memref<128x8xf32, #tpu.memory_space<vmem>>, vector<128x8xf32>,
    return
  }
  func.func @transform_0(%arg0: i32) -> (i32, i32) {
    %c0_i32 = arith.constant 0 : i32
    %c0_i32_0 = arith.constant 0 : i32
    return %arg0, %c0_i32 : i32, i32
  }
  func.func @transform_1(%arg0: i32) -> (i32, i32) {
    %c0_i32 = arith.constant 0 : i32
    %c0_i32_0 = arith.constant 0 : i32
    %c0_i32_1 = arith.constant 0 : i32
    return %c0_i32, %c0_i32_0 : i32, i32
  }
  func.func @transform_2(%arg0: i32) -> (i32, i32) {
    %c0_i32 = arith.constant 0 : i32
    %c0_i32_0 = arith.constant 0 : i32
    %c0_i32_1 = arith.constant 0 : i32
    return %c0_i32, %c0_i32_0 : i32, i32
  }
  func.func @transform_3(%arg0: i32) -> (i32, i32) {
    %c0_i32 = arith.constant 0 : i32
    %c0_i32_0 = arith.constant 0 : i32
    %c0_i32_1 = arith.constant 0 : i32
    return %c0_i32, %c0_i32_0 : i32, i32
  }
  func.func @transform_4(%arg0: i32) -> (i32, i32) {
    %c0_i32 = arith.constant 0 : i32
    %c0_i32_0 = arith.constant 0 : i32
    %c0_i32_1 = arith.constant 0 : i32
    return %c0_i32, %c0_i32_0 : i32, i32
  }
  func.func @transform_5(%arg0: i32) -> (i32, i32) {
    %c0_i32 = arith.constant 0 : i32
    %c0_i32_0 = arith.constant 0 : i32
    %c0_i32_1 = arith.constant 0 : i32
    return %c0_i32, %c0_i32_0 : i32, i32
  }
  func.func @transform_6(%arg0: i32) -> (i32, i32) {
    %c0_i32 = arith.constant 0 : i32
    %c0_i32_0 = arith.constant 0 : i32
    %c0_i32_1 = arith.constant 0 : i32
    return %c0_i32, %c0_i32_0 : i32, i32
  }
  func.func @transform_7(%arg0: i32) -> (i32, i32) {
    %c0_i32 = arith.constant 0 : i32
    %c0_i32_0 = arith.constant 0 : i32
    %c0_i32_1 = arith.constant 0 : i32
    return %c0_i32, %c0_i32_0 : i32, i32
  }
  func.func @transform_8(%arg0: i32) -> (i32, i32) {
    %c0_i32 = arith.constant 0 : i32
    %c0_i32_0 = arith.constant 0 : i32
    %c0_i32_1 = arith.constant 0 : i32
    return %c0_i32, %c0_i32_0 : i32, i32
  }
  func.func @transform_9(%arg0: i32) -> (i32, i32) {
    %c0_i32 = arith.constant 0 : i32
    %c0_i32_0 = arith.constant 0 : i32
    return %arg0, %c0_i32 : i32, i32
  }
}

</mosaic_0001>

<bundles_post_ra>
// kernel: pinn_forward.1
= control target key start
LH: loop header
LB: loop body
LE: loop exit
PB: predicated region body
PF: predicated region fallthrough
CT: control target
= control target key end

     0   :  { %vm57_vm0 = vcmask 130048   ;;  %vm803_vm1 = vcmask 64512   ;;  %s1772_s1 = inlined_call_operand.vmem [shape: f32[16,128], index: 1, kind: input, shape index: {}]   ;;  %s1773_s0 = inlined_call_operand.vmem [shape: f32[128,16], index: 0, kind: input, shape index: {}]   ;;  %s1774_s3 = inlined_call_operand.vmem [shape: f32[128,128], index: 3, kind: input, shape index: {}]   ;;  %s1775_s5 = inlined_call_operand.vmem [shape: f32[128,128], index: 5, kind: input, shape index: {}]   ;;  %s1776_s2 = inlined_call_operand.vmem [shape: f32[1,128], index: 2, kind: input, shape index: {}]   ;;  %s1777_s7 = inlined_call_operand.vmem [shape: f32[128,8], index: 7, kind: input, shape index: {}]   ;;  %s1778_s4 = inlined_call_operand.vmem [shape: f32[1,128], index: 4, kind: input, shape index: {}]   ;;  %s1779_s6 = inlined_call_operand.vmem [shape: f32[1,128], index: 6, kind: input, shape index: {}]   ;;  %s1780_s8 = inlined_call_operand.vmem [shape: f32[1,8], index: 8, kind: input, shape index: {}]   ;;  %s1781_s9 = inlined_call_operand.vmem [shape: f32[128,8], index: 9, kind: output, shape index: {}]  }
   0x1   :  { %v48_v0 = vld [vmem:[%s1772_s1] sm:$0xff]  ;;  %v49_v1 = vld [vmem:[%s1772_s1 + $0x8] sm:$0xff]  ;;  %v34_v5 = vld [vmem:[%s1773_s0 + $0x10] sm:$0xff] }
   0x2   :  { %v32_v2 = vld [vmem:[%s1773_s0] sm:$0xff]  ;;  %v1154_v3 = vpack.c.bf16 %v49_v1, %v48_v0  ;;  %v33_v4 = vld [vmem:[%s1773_s0 + $0x8] sm:$0xff]  ;;  %v269_v8 = vld [vmem:[%s1774_s3 + $0x10] sm:$0xff] }
   0x3   :  { %962 = vmatprep.mubr.msk.f32.mxu0 %vm57_vm0, %v32_v2  ;;  %v267_v6 = vld [vmem:[%s1774_s3] sm:$0xff]  ;;  %v268_v7 = vld [vmem:[%s1774_s3 + $0x8] sm:$0xff]  ;;  %v270_v10 = vld [vmem:[%s1774_s3 + $0x18] sm:$0xff] }
   0x4   :  { %1155 = vmatprep.subr.bf16.mxu0 %v1154_v3  ;;  %v1158_v9 = vpack.c.bf16 %v268_v7, %v267_v6  ;;  %v35_v11 = vld [vmem:[%s1773_s0 + $0x18] sm:$0xff]  ;;  %v1162_v12 = vpack.c.bf16 %v270_v10, %v269_v8  ;;  %v271_v13 = vld [vmem:[%s1774_s3 + $0x20] sm:$0xff]  ;;  %v272_v14 = vld [vmem:[%s1774_s3 + $0x28] sm:$0xff] }
   0x5   :  { %1157 = vmatpush3.bf16.msra.mxu0 %v1154_v3  ;;  %v36_v15 = vld [vmem:[%s1773_s0 + $0x20] sm:$0xff]  ;;  %v1166_v16 = vpack.c.bf16 %v272_v14, %v271_v13  ;;  %v37_v17 = vld [vmem:[%s1773_s0 + $0x28] sm:$0xff]  ;;  %v273_v18 = vld [vmem:[%s1774_s3 + $0x30] sm:$0xff] }
   0x6   :  { %1159 = vmatprep.subr.bf16.mxu1 %v1158_v9  ;;  %v274_v19 = vld [vmem:[%s1774_s3 + $0x38] sm:$0xff]  ;;  %v38_v20 = vld [vmem:[%s1773_s0 + $0x30] sm:$0xff]  ;;  %v40_v23 = vld [vmem:[%s1773_s0 + $0x40] sm:$0xff] }
   0x7   :  { %1161 = vmatpush3.bf16.msra.mxu1 %v1158_v9  ;;  %v1170_v21 = vpack.c.bf16 %v274_v19, %v273_v18  ;;  %v39_v22 = vld [vmem:[%s1773_s0 + $0x38] sm:$0xff]  ;;  %v41_v24 = vld [vmem:[%s1773_s0 + $0x48] sm:$0xff]  ;;  %v42_v25 = vld [vmem:[%s1773_s0 + $0x50] sm:$0xff] }
   0x8   :  { %963 = vmatmul.mubr.msk.f32.vlgmr.msra.gmra.mrb[0].mxu0 %vm57_vm0, %v33_v4  ;;  %1163 = vmatprep.subr.bf16.mxu1 %v1162_v12  ;;  %v43_v26 = vld [vmem:[%s1773_s0 + $0x58] sm:$0xff]  ;;  %v44_v27 = vld [vmem:[%s1773_s0 + $0x60] sm:$0xff]  ;;  %v45_v28 = vld [vmem:[%s1773_s0 + $0x68] sm:$0xff] }
   0x9   :  { %965 = vmatprep.mubr.msk.f32.mxu0 %vm57_vm0, %v34_v5  ;;  %v46_v29 = vld [vmem:[%s1773_s0 + $0x70] sm:$0xff]  ;;  %v47_v30 = vld [vmem:[%s1773_s0 + $0x78] sm:$0xff]  ;;  %v275_v31 = vld [vmem:[%s1774_s3 + $0x40] sm:$0xff] }
   0xa   :  { %v276_v32 = vld [vmem:[%s1774_s3 + $0x48] sm:$0xff]  ;;  %v277_v34 = vld [vmem:[%s1774_s3 + $0x50] sm:$0xff]  ;;  %v278_v35 = vld [vmem:[%s1774_s3 + $0x58] sm:$0xff] }
   0xb   :  { %1165 = vmatpush3.bf16.msra.mxu1 %v1162_v12  ;;  %v1174_v33 = vpack.c.bf16 %v276_v32, %v275_v31  ;;  %v1178_v36 = vpack.c.bf16 %v278_v35, %v277_v34  ;;  %v279_v37 = vld [vmem:[%s1774_s3 + $0x60] sm:$0xff]  ;;  %v280_v38 = vld [vmem:[%s1774_s3 + $0x68] sm:$0xff]  ;;  %v281_v40 = vld [vmem:[%s1774_s3 + $0x70] sm:$0xff] }
   0xc   :  { %966 = vmatmul.mubr.msk.f32.gmra.mrb[2].mxu0 %vm57_vm0, %v35_v11  ;;  %1167 = vmatprep.subr.bf16.mxu1 %v1166_v16  ;;  %v1182_v39 = vpack.c.bf16 %v280_v38, %v279_v37  ;;  %v282_v41 = vld [vmem:[%s1774_s3 + $0x78] sm:$0xff]  ;;  %v451_v43 = vld [vmem:[%s1775_s5] sm:$0xff]  ;;  %v452_v44 = vld [vmem:[%s1775_s5 + $0x8] sm:$0xff] }
   0xd   :  { %968 = vmatprep.mubr.msk.f32.mxu0 %vm57_vm0, %v36_v15  ;;  %v1186_v42 = vpack.c.bf16 %v282_v41, %v281_v40  ;;  %v453_v45 = vld [vmem:[%s1775_s5 + $0x10] sm:$0xff]  ;;  %v1190_v46 = vpack.c.bf16 %v452_v44, %v451_v43  ;;  %v454_v47 = vld [vmem:[%s1775_s5 + $0x18] sm:$0xff]  ;;  %v455_v49 = vld [vmem:[%s1775_s5 + $0x20] sm:$0xff] }
   0xe   :  { %v1194_v48 = vpack.c.bf16 %v454_v47, %v453_v45  ;;  %v456_v50 = vld [vmem:[%s1775_s5 + $0x28] sm:$0xff]  ;;  %v457_v52 = vld [vmem:[%s1775_s5 + $0x30] sm:$0xff]  ;;  %v458_v53 = vld [vmem:[%s1775_s5 + $0x38] sm:$0xff] }
   0xf   :  { %1169 = vmatpush3.bf16.msra.mxu1 %v1166_v16  ;;  %1191 = vmatprep.subr.bf16.mxu0 %v1190_v46  ;;  %v1198_v51 = vpack.c.bf16 %v456_v50, %v455_v49  ;;  %v1202_v54 = vpack.c.bf16 %v458_v53, %v457_v52  ;;  %v459_v55 = vld [vmem:[%s1775_s5 + $0x40] sm:$0xff]  ;;  %v460_v56 = vld [vmem:[%s1775_s5 + $0x48] sm:$0xff]  ;;  %v461_v43 = vld [vmem:[%s1775_s5 + $0x50] sm:$0xff] }
  0x10   :  { %969 = vmatmul.mubr.msk.f32.gmra.mrb[4].mxu0 %vm57_vm0, %v37_v17  ;;  %1171 = vmatprep.subr.bf16.mxu1 %v1170_v21  ;;  %v1206_v57 = vpack.c.bf16 %v460_v56, %v459_v55  ;;  %v1567_v58 = vld [vmem:[%s1776_s2] ss:$0 sm:$0xff]  ;;  %v462_v44 = vld [vmem:[%s1775_s5 + $0x58] sm:$0xff]  ;;  %v464_v47 = vld [vmem:[%s1775_s5 + $0x68] sm:$0xff] }
  0x11   :  { %971 = vmatprep.mubr.msk.f32.mxu0 %vm57_vm0, %v38_v20  ;;  %1193 = vmatpush3.bf16.msra.mxu0 %v1190_v46  ;;  %v1210_v45 = vpack.c.bf16 %v462_v44, %v461_v43  ;;  %v463_v46 = vld [vmem:[%s1775_s5 + $0x60] sm:$0xff]  ;;  %v465_v49 = vld [vmem:[%s1775_s5 + $0x70] sm:$0xff]  ;;  %v466_v50 = vld [vmem:[%s1775_s5 + $0x78] sm:$0xff] }
  0x12   :  { %1195 = vmatprep.subr.bf16.mxu0 %v1194_v48  ;;  %v635_v52 = vld [vmem:[%s1777_s7] sm:$0xff]  ;;  %v636_v53 = vld [vmem:[%s1777_s7 + $0x8] sm:$0xff]  ;;  %v638_v56 = vld [vmem:[%s1777_s7 + $0x18] sm:$0xff] }
  0x13   :  { %1173 = vmatpush3.bf16.msra.mxu1 %v1170_v21  ;;  %v1222_v55 = vpack.c.bf16 %v636_v53, %v635_v52  ;;  %v645_v52 = vld [vmem:[%s1777_s7 + $0x50] sm:$0xff]  ;;  %v646_v53 = vld [vmem:[%s1777_s7 + $0x58] sm:$0xff] }
  0x14   :  { %972 = vmatmul.mubr.msk.f32.gmra.mrb[6].mxu0 %vm57_vm0, %v39_v22  ;;  %1175 = vmatprep.subr.bf16.mxu1 %v1174_v33 }
  0x15   :  { %974 = vmatprep.mubr.msk.f32.mxu0 %vm57_vm0, %v40_v23  ;;  %1197 = vmatpush3.bf16.msra.mxu0 %v1194_v48  ;;  %v1214_v48 = vpack.c.bf16 %v464_v47, %v463_v46 }
  0x16   :  { %1199 = vmatprep.subr.bf16.mxu0 %v1198_v51 }
  0x17   :  { %1177 = vmatpush3.bf16.msra.mxu1 %v1174_v33 }
  0x18   :  { %975 = vmatmul.mubr.msk.f32.gmra.mrb[8].mxu0 %vm57_vm0, %v41_v24  ;;  %1179 = vmatprep.subr.bf16.mxu1 %v1178_v36 }
  0x19   :  { %977 = vmatprep.mubr.msk.f32.mxu0 %vm57_vm0, %v42_v25  ;;  %1201 = vmatpush3.bf16.msra.mxu0 %v1198_v51  ;;  %v1218_v51 = vpack.c.bf16 %v466_v50, %v465_v49  ;;  %v643_v49 = vld [vmem:[%s1777_s7 + $0x40] sm:$0xff]  ;;  %v644_v50 = vld [vmem:[%s1777_s7 + $0x48] sm:$0xff] }
  0x1a   :  { %1203 = vmatprep.subr.bf16.mxu0 %v1202_v54 }
  0x1b   :  { %1181 = vmatpush3.bf16.msra.mxu1 %v1178_v36 }
  0x1c   :  { %978 = vmatmul.mubr.msk.f32.gmra.mrb[10].mxu0 %vm57_vm0, %v43_v26  ;;  %1183 = vmatprep.subr.bf16.mxu1 %v1182_v39 }
  0x1d   :  { %980 = vmatprep.mubr.msk.f32.mxu0 %vm57_vm0, %v44_v27  ;;  %1205 = vmatpush3.bf16.msra.mxu0 %v1202_v54  ;;  %v637_v54 = vld [vmem:[%s1777_s7 + $0x10] sm:$0xff] }
  0x1e   :  { %1207 = vmatprep.subr.bf16.mxu0 %v1206_v57 }
  0x1f   :  { %1185 = vmatpush3.bf16.msra.mxu1 %v1182_v39 }
  0x20   :  { %981 = vmatmul.mubr.msk.f32.gmra.mrb[12].mxu0 %vm57_vm0, %v45_v28  ;;  %1187 = vmatprep.subr.bf16.mxu1 %v1186_v42 }
  0x21   :  { %983 = vmatprep.mubr.msk.f32.mxu0 %vm57_vm0, %v46_v29  ;;  %1209 = vmatpush3.bf16.msra.mxu0 %v1206_v57  ;;  %v1226_v57 = vpack.c.bf16 %v638_v56, %v637_v54  ;;  %v1242_v54 = vpack.c.bf16 %v646_v53, %v645_v52  ;;  %v648_v56 = vld [vmem:[%s1777_s7 + $0x68] sm:$0xff] }
  0x22   :  { %1211 = vmatprep.subr.bf16.mxu0 %v1210_v45 }
  0x23   :  { %1189 = vmatpush3.bf16.msra.mxu1 %v1186_v42 }
  0x24   :  { %984 = vmatmul.mubr.msk.f32.gmra.mrb[14].mxu0 %vm57_vm0, %v47_v30  ;;  %1254 = vmatprep.subr.bf16.mxu1 %v1222_v55 }
  0x25   :  { %1213 = vmatpush3.bf16.msra.mxu0 %v1210_v45 }
  0x26   :  { %1215 = vmatprep.subr.bf16.mxu0 %v1214_v48 }
  0x29   :  { %1217 = vmatpush3.bf16.msra.mxu0 %v1214_v48 }
  0x2a   :  { %1219 = vmatprep.subr.bf16.mxu0 %v1218_v51 }
  0x2d   :  { %1221 = vmatpush3.bf16.msra.mxu0 %v1218_v51  ;;  %v1238_v51 = vpack.c.bf16 %v644_v50, %v643_v49 }
  0x2e   :  { %1223 = vmatprep.subr.bf16.mxu0 %v1222_v55 }
  0xdb   :  { %v964_v59 = vpop.f32.mrb[0].mxu0 }
  0xdc   :  { %v178_v60 = vadd.f32 %v964_v59, %v1567_v58  ;;  %v172_v61 = vpop.f32.mrb[1].mxu0  ;;  %v640_v59 = vld [vmem:[%s1777_s7 + $0x28] sm:$0xff] }
  0xdd   :  { %v173_v62 = vadd.f32 %v1567_v58, %v172_v61  ;;  %v641_v61 = vld [vmem:[%s1777_s7 + $0x30] sm:$0xff] }
  0xdf   :  { %1270 = vtanh.f32 %v173_v62  ;;  %v967_v63 = vpop.f32.mrb[2].mxu0  ;;  %v642_v62 = vld [vmem:[%s1777_s7 + $0x38] sm:$0xff] }
  0xe0   :  { %1272 = vtanh.f32 %v178_v60  ;;  %v188_v0 = vadd.f32 %v967_v63, %v1567_v58  ;;  %v182_v1 = vpop.f32.mrb[3].mxu0  ;;  %v1630_v63 = vpack.c.bf16 %v642_v62, %v641_v61  ;;  %v1687_v61 = vld [vmem:[%s1779_s6] ss:$0 sm:$0xff] }
  0xe1   :  { %v183_v2 = vadd.f32 %v1567_v58, %v182_v1 }
  0xe3   :  { %1274 = vtanh.f32 %v183_v2  ;;  %v970_v3 = vpop.f32.mrb[4].mxu0 }
  0xe4   :  { %1276 = vtanh.f32 %v188_v0  ;;  %v198_v4 = vadd.f32 %v970_v3, %v1567_v58  ;;  %v192_v5 = vpop.f32.mrb[5].mxu0  ;;  %v1638_v0 = vld [vmem:[%s1778_s4] ss:$0 sm:$0xff] }
  0xe5   :  { %v193_v6 = vadd.f32 %v1567_v58, %v192_v5 }
  0xe7   :  { %1278 = vtanh.f32 %v193_v6  ;;  %v973_v7 = vpop.f32.mrb[6].mxu0 }
  0xe8   :  { %1280 = vtanh.f32 %v198_v4  ;;  %v208_v8 = vadd.f32 %v973_v7, %v1567_v58  ;;  %v202_v9 = vpop.f32.mrb[7].mxu0 }
  0xe9   :  { %v1271_v10 = vpop.eup %1270  ;;  %v203_v11 = vadd.f32 %v1567_v58, %v202_v9 }
  0xea   :  { %v1273_v12 = vpop.eup %1272  ;;  %1018 = vmatprep.mubr.f32.mxu1 %v1271_v10 }
  0xeb   :  { %1282 = vtanh.f32 %v203_v11  ;;  %v976_v13 = vpop.f32.mrb[8].mxu0  ;;  %1019 = vmatmul.mubr.f32.vlgmr.msra.gmra.mrb[0].mxu1 %v1273_v12 }
  0xec   :  { %1284 = vtanh.f32 %v208_v8  ;;  %v218_v14 = vadd.f32 %v976_v13, %v1567_v58  ;;  %v212_v15 = vpop.f32.mrb[9].mxu0  ;;  %1262 = vmatpush3.bf16.msra.mxu1 %v1222_v55 }
  0xed   :  { %v1275_v16 = vpop.eup %1274  ;;  %v213_v17 = vadd.f32 %v1567_v58, %v212_v15  ;;  %1255 = vmatprep.subr.bf16.mxu1 %v1226_v57 }
  0xee   :  { %v1277_v18 = vpop.eup %1276  ;;  %1021 = vmatprep.mubr.f32.mxu1 %v1275_v16 }
  0xef   :  { %1286 = vtanh.f32 %v213_v17  ;;  %v979_v19 = vpop.f32.mrb[10].mxu0  ;;  %1022 = vmatmul.mubr.f32.gmra.mrb[2].mxu1 %v1277_v18 }
  0xf0   :  { %1288 = vtanh.f32 %v218_v14  ;;  %v228_v20 = vadd.f32 %v979_v19, %v1567_v58  ;;  %v222_v21 = vpop.f32.mrb[11].mxu0  ;;  %1263 = vmatpush3.bf16.msra.mxu1 %v1226_v57 }
  0xf1   :  { %v1279_v22 = vpop.eup %1278  ;;  %v223_v23 = vadd.f32 %v1567_v58, %v222_v21 }
  0xf2   :  { %v1281_v24 = vpop.eup %1280  ;;  %1024 = vmatprep.mubr.f32.mxu1 %v1279_v22 }
  0xf3   :  { %1290 = vtanh.f32 %v223_v23  ;;  %v982_v25 = vpop.f32.mrb[12].mxu0  ;;  %1025 = vmatmul.mubr.f32.gmra.mrb[4].mxu1 %v1281_v24 }
  0xf4   :  { %1292 = vtanh.f32 %v228_v20  ;;  %v238_v26 = vadd.f32 %v982_v25, %v1567_v58  ;;  %v232_v27 = vpop.f32.mrb[13].mxu0 }
  0xf5   :  { %v1283_v28 = vpop.eup %1282  ;;  %v233_v29 = vadd.f32 %v1567_v58, %v232_v27 }
  0xf6   :  { %v1285_v30 = vpop.eup %1284  ;;  %1027 = vmatprep.mubr.f32.mxu1 %v1283_v28 }
  0xf7   :  { %1294 = vtanh.f32 %v233_v29  ;;  %v985_v31 = vpop.f32.mrb[14].mxu0  ;;  %1028 = vmatmul.mubr.f32.gmra.mrb[6].mxu1 %v1285_v30 }
  0xf8   :  { %1296 = vtanh.f32 %v238_v26  ;;  %v248_v32 = vadd.f32 %v985_v31, %v1567_v58  ;;  %v242_v33 = vpop.f32.mrb[15].mxu0 }
  0xf9   :  { %v1287_v34 = vpop.eup %1286  ;;  %v243_v35 = vadd.f32 %v1567_v58, %v242_v33  ;;  %v639_v58 = vld [vmem:[%s1777_s7 + $0x20] sm:$0xff] }
  0xfa   :  { %v1289_v36 = vpop.eup %1288  ;;  %1030 = vmatprep.mubr.f32.mxu1 %v1287_v34  ;;  %v1621_v60 = vpack.c.bf16 %v640_v59, %v639_v58  ;;  %v649_v58 = vld [vmem:[%s1777_s7 + $0x70] sm:$0xff]  ;;  %v650_v59 = vld [vmem:[%s1777_s7 + $0x78] sm:$0xff] }
  0xfb   :  { %1298 = vtanh.f32 %v243_v35  ;;  %1031 = vmatmul.mubr.f32.gmra.mrb[8].mxu1 %v1289_v36 }
  0xfc   :  { %1300 = vtanh.f32 %v248_v32  ;;  %1256 = vmatprep.subr.bf16.mxu1 %v1621_v60 }
  0xfd   :  { %v1291_v37 = vpop.eup %1290  ;;  %1264 = vmatpush3.bf16.msra.mxu1 %v1621_v60 }
  0xfe   :  { %v1293_v38 = vpop.eup %1292  ;;  %1033 = vmatprep.mubr.f32.mxu1 %v1291_v37  ;;  %1257 = vmatprep.subr.bf16.mxu1 %v1630_v63 }
  0xff   :  { %1034 = vmatmul.mubr.f32.gmra.mrb[10].mxu1 %v1293_v38 }
 0x101   :  { %v1295_v39 = vpop.eup %1294  ;;  %1265 = vmatpush3.bf16.msra.mxu1 %v1630_v63 }
 0x102   :  { %v1297_v40 = vpop.eup %1296  ;;  %1036 = vmatprep.mubr.f32.mxu1 %v1295_v39  ;;  %1258 = vmatprep.subr.bf16.mxu1 %v1238_v51 }
 0x103   :  { %1037 = vmatmul.mubr.f32.gmra.mrb[12].mxu1 %v1297_v40 }
 0x105   :  { %v1299_v41 = vpop.eup %1298  ;;  %1266 = vmatpush3.bf16.msra.mxu1 %v1238_v51 }
 0x106   :  { %v1301_v42 = vpop.eup %1300  ;;  %1039 = vmatprep.mubr.f32.mxu1 %v1299_v41  ;;  %1259 = vmatprep.subr.bf16.mxu1 %v1242_v54 }
 0x107   :  { %1040 = vmatmul.mubr.f32.gmra.mrb[14].mxu1 %v1301_v42 }
 0x109   :  { %1267 = vmatpush3.bf16.msra.mxu1 %v1242_v54 }
 0x1be   :  { %v1020_v1 = vpop.f32.mrb[0].mxu1 }
 0x1bf   :  { %v362_v2 = vadd.f32 %v1020_v1, %v1638_v0  ;;  %v356_v3 = vpop.f32.mrb[1].mxu1 }
 0x1c0   :  { %v357_v4 = vadd.f32 %v1638_v0, %v356_v3 }
 0x1c2   :  { %1302 = vtanh.f32 %v357_v4  ;;  %v1023_v5 = vpop.f32.mrb[2].mxu1 }
 0x1c3   :  { %1304 = vtanh.f32 %v362_v2  ;;  %v372_v6 = vadd.f32 %v1023_v5, %v1638_v0  ;;  %v366_v7 = vpop.f32.mrb[3].mxu1 }
 0x1c4   :  { %v367_v8 = vadd.f32 %v1638_v0, %v366_v7 }
 0x1c6   :  { %1306 = vtanh.f32 %v367_v8  ;;  %v1026_v9 = vpop.f32.mrb[4].mxu1 }
 0x1c7   :  { %1308 = vtanh.f32 %v372_v6  ;;  %v382_v10 = vadd.f32 %v1026_v9, %v1638_v0  ;;  %v376_v11 = vpop.f32.mrb[5].mxu1 }
 0x1c8   :  { %v377_v12 = vadd.f32 %v1638_v0, %v376_v11 }
 0x1ca   :  { %1310 = vtanh.f32 %v377_v12  ;;  %v1029_v13 = vpop.f32.mrb[6].mxu1 }
 0x1cb   :  { %1312 = vtanh.f32 %v382_v10  ;;  %v392_v14 = vadd.f32 %v1029_v13, %v1638_v0  ;;  %v386_v15 = vpop.f32.mrb[7].mxu1 }
 0x1cc   :  { %v1303_v16 = vpop.eup %1302  ;;  %v387_v17 = vadd.f32 %v1638_v0, %v386_v15 }
 0x1cd   :  { %v1305_v18 = vpop.eup %1304  ;;  %1074 = vmatprep.mubr.f32.mxu0 %v1303_v16 }
 0x1ce   :  { %1314 = vtanh.f32 %v387_v17  ;;  %v1032_v19 = vpop.f32.mrb[8].mxu1  ;;  %1075 = vmatmul.mubr.f32.vlgmr.msra.gmra.mrb[16].mxu0 %v1305_v18 }
 0x1cf   :  { %1316 = vtanh.f32 %v392_v14  ;;  %v402_v20 = vadd.f32 %v1032_v19, %v1638_v0  ;;  %v396_v21 = vpop.f32.mrb[9].mxu1  ;;  %1225 = vmatpush3.bf16.msra.mxu0 %v1222_v55  ;;  %v647_v55 = vld [vmem:[%s1777_s7 + $0x60] sm:$0xff] }
 0x1d0   :  { %v1307_v22 = vpop.eup %1306  ;;  %v397_v23 = vadd.f32 %v1638_v0, %v396_v21  ;;  %1227 = vmatprep.subr.bf16.mxu0 %v1226_v57 }
 0x1d1   :  { %v1309_v24 = vpop.eup %1308  ;;  %1077 = vmatprep.mubr.f32.mxu0 %v1307_v22 }
 0x1d2   :  { %1318 = vtanh.f32 %v397_v23  ;;  %v1035_v25 = vpop.f32.mrb[10].mxu1  ;;  %1078 = vmatmul.mubr.f32.gmra.mrb[18].mxu0 %v1309_v24 }
 0x1d3   :  { %1320 = vtanh.f32 %v402_v20  ;;  %v412_v26 = vadd.f32 %v1035_v25, %v1638_v0  ;;  %v406_v27 = vpop.f32.mrb[11].mxu1  ;;  %1229 = vmatpush3.bf16.msra.mxu0 %v1226_v57  ;;  %v1246_v57 = vpack.c.bf16 %v648_v56, %v647_v55 }
 0x1d4   :  { %v1311_v28 = vpop.eup %1310  ;;  %v407_v29 = vadd.f32 %v1638_v0, %v406_v27  ;;  %1231 = vmatprep.subr.bf16.mxu0 %v1621_v60 }
 0x1d5   :  { %v1313_v30 = vpop.eup %1312  ;;  %1080 = vmatprep.mubr.f32.mxu0 %v1311_v28  ;;  %1260 = vmatprep.subr.bf16.mxu1 %v1246_v57 }
 0x1d6   :  { %1322 = vtanh.f32 %v407_v29  ;;  %v1038_v31 = vpop.f32.mrb[12].mxu1  ;;  %1081 = vmatmul.mubr.f32.gmra.mrb[20].mxu0 %v1313_v30  ;;  %1268 = vmatpush3.bf16.msra.mxu1 %v1246_v57 }
 0x1d7   :  { %1324 = vtanh.f32 %v412_v26  ;;  %v422_v32 = vadd.f32 %v1038_v31, %v1638_v0  ;;  %v416_v33 = vpop.f32.mrb[13].mxu1  ;;  %1233 = vmatpush3.bf16.msra.mxu0 %v1621_v60  ;;  %v1250_v60 = vpack.c.bf16 %v650_v59, %v649_v58 }
 0x1d8   :  { %v1315_v34 = vpop.eup %1314  ;;  %v417_v35 = vadd.f32 %v1638_v0, %v416_v33  ;;  %1235 = vmatprep.subr.bf16.mxu0 %v1630_v63 }
 0x1d9   :  { %v1317_v36 = vpop.eup %1316  ;;  %1083 = vmatprep.mubr.f32.mxu0 %v1315_v34  ;;  %1261 = vmatprep.subr.bf16.mxu1 %v1250_v60 }
 0x1da   :  { %1326 = vtanh.f32 %v417_v35  ;;  %v1041_v37 = vpop.f32.mrb[14].mxu1  ;;  %1084 = vmatmul.mubr.f32.gmra.mrb[22].mxu0 %v1317_v36  ;;  %1269 = vmatpush3.bf16.msra.mxu1 %v1250_v60 }
 0x1db   :  { %1328 = vtanh.f32 %v422_v32  ;;  %v432_v38 = vadd.f32 %v1041_v37, %v1638_v0  ;;  %v426_v39 = vpop.f32.mrb[15].mxu1  ;;  %1237 = vmatpush3.bf16.msra.mxu0 %v1630_v63 }
 0x1dc   :  { %v1319_v40 = vpop.eup %1318  ;;  %v427_v41 = vadd.f32 %v1638_v0, %v426_v39  ;;  %1239 = vmatprep.subr.bf16.mxu0 %v1238_v51 }
 0x1dd   :  { %v1321_v42 = vpop.eup %1320  ;;  %1086 = vmatprep.mubr.f32.mxu0 %v1319_v40 }
 0x1de   :  { %1330 = vtanh.f32 %v427_v41  ;;  %1087 = vmatmul.mubr.f32.gmra.mrb[24].mxu0 %v1321_v42 }
 0x1df   :  { %1332 = vtanh.f32 %v432_v38  ;;  %1241 = vmatpush3.bf16.msra.mxu0 %v1238_v51 }
 0x1e0   :  { %v1323_v43 = vpop.eup %1322  ;;  %1243 = vmatprep.subr.bf16.mxu0 %v1242_v54 }
 0x1e1   :  { %v1325_v44 = vpop.eup %1324  ;;  %1089 = vmatprep.mubr.f32.mxu0 %v1323_v43 }
 0x1e2   :  { %1090 = vmatmul.mubr.f32.gmra.mrb[26].mxu0 %v1325_v44 }
 0x1e3   :  { %1245 = vmatpush3.bf16.msra.mxu0 %v1242_v54 }
 0x1e4   :  { %v1327_v45 = vpop.eup %1326  ;;  %1247 = vmatprep.subr.bf16.mxu0 %v1246_v57 }
 0x1e5   :  { %v1329_v46 = vpop.eup %1328  ;;  %1092 = vmatprep.mubr.f32.mxu0 %v1327_v45 }
 0x1e6   :  { %1093 = vmatmul.mubr.f32.gmra.mrb[28].mxu0 %v1329_v46  ;;  %v843_v46 = vld [vmem:[%s1780_s8] ss:$0 sm:$0xff] }
 0x1e7   :  { %1249 = vmatpush3.bf16.msra.mxu0 %v1246_v57 }
 0x1e8   :  { %v1331_v47 = vpop.eup %1330  ;;  %1251 = vmatprep.subr.bf16.mxu0 %v1250_v60 }
 0x1e9   :  { %v1333_v48 = vpop.eup %1332  ;;  %1095 = vmatprep.mubr.f32.mxu0 %v1331_v47 }
 0x1ea   :  { %1096 = vmatmul.mubr.f32.gmra.mrb[30].mxu0 %v1333_v48 }
 0x1eb   :  { %1253 = vmatpush3.bf16.msra.mxu0 %v1250_v60 }
 0x2a1   :  { %v1076_v62 = vpop.f32.mrb[16].mxu0 }
 0x2a2   :  { %v546_v63 = vadd.f32 %v1076_v62, %v1687_v61  ;;  %v540_v0 = vpop.f32.mrb[17].mxu0 }
 0x2a3   :  { %v541_v1 = vadd.f32 %v1687_v61, %v540_v0 }
 0x2a5   :  { %1334 = vtanh.f32 %v541_v1  ;;  %v1079_v2 = vpop.f32.mrb[18].mxu0 }
 0x2a6   :  { %1336 = vtanh.f32 %v546_v63  ;;  %v556_v3 = vadd.f32 %v1079_v2, %v1687_v61  ;;  %v550_v4 = vpop.f32.mrb[19].mxu0 }
 0x2a7   :  { %v551_v5 = vadd.f32 %v1687_v61, %v550_v4 }
 0x2a9   :  { %1338 = vtanh.f32 %v551_v5  ;;  %v1082_v6 = vpop.f32.mrb[20].mxu0 }
 0x2aa   :  { %1340 = vtanh.f32 %v556_v3  ;;  %v566_v7 = vadd.f32 %v1082_v6, %v1687_v61  ;;  %v560_v8 = vpop.f32.mrb[21].mxu0 }
 0x2ab   :  { %v561_v9 = vadd.f32 %v1687_v61, %v560_v8 }
 0x2ad   :  { %1342 = vtanh.f32 %v561_v9  ;;  %v1085_v10 = vpop.f32.mrb[22].mxu0 }
 0x2ae   :  { %1344 = vtanh.f32 %v566_v7  ;;  %v576_v11 = vadd.f32 %v1085_v10, %v1687_v61  ;;  %v570_v12 = vpop.f32.mrb[23].mxu0 }
 0x2af   :  { %v1335_v13 = vpop.eup %1334  ;;  %v571_v14 = vadd.f32 %v1687_v61, %v570_v12 }
 0x2b0   :  { %v1337_v15 = vpop.eup %1336  ;;  %1130 = vmatprep.mubr.f32.mxu0 %v1335_v13 }
 0x2b1   :  { %1346 = vtanh.f32 %v571_v14  ;;  %v1088_v16 = vpop.f32.mrb[24].mxu0  ;;  %1131 = vmatmul.mubr.f32.vlgmr.msra.gmra.mrb[32].mxu0 %v1337_v15 }
 0x2b2   :  { %1348 = vtanh.f32 %v576_v11  ;;  %v586_v17 = vadd.f32 %v1088_v16, %v1687_v61  ;;  %v580_v18 = vpop.f32.mrb[25].mxu0 }
 0x2b3   :  { %v1339_v19 = vpop.eup %1338  ;;  %v581_v20 = vadd.f32 %v1687_v61, %v580_v18 }
 0x2b4   :  { %v1341_v21 = vpop.eup %1340  ;;  %1133 = vmatprep.mubr.f32.mxu0 %v1339_v19 }
 0x2b5   :  { %1350 = vtanh.f32 %v581_v20  ;;  %v1091_v22 = vpop.f32.mrb[26].mxu0  ;;  %1134 = vmatmul.mubr.f32.gmra.mrb[34].mxu0 %v1341_v21 }
 0x2b6   :  { %1352 = vtanh.f32 %v586_v17  ;;  %v596_v23 = vadd.f32 %v1091_v22, %v1687_v61  ;;  %v590_v24 = vpop.f32.mrb[27].mxu0 }
 0x2b7   :  { %v1343_v25 = vpop.eup %1342  ;;  %v591_v26 = vadd.f32 %v1687_v61, %v590_v24 }
 0x2b8   :  { %v1345_v27 = vpop.eup %1344  ;;  %1136 = vmatprep.mubr.f32.mxu0 %v1343_v25 }
 0x2b9   :  { %1354 = vtanh.f32 %v591_v26  ;;  %v1094_v28 = vpop.f32.mrb[28].mxu0  ;;  %1137 = vmatmul.mubr.f32.gmra.mrb[36].mxu0 %v1345_v27 }
 0x2ba   :  { %1356 = vtanh.f32 %v596_v23  ;;  %v606_v29 = vadd.f32 %v1094_v28, %v1687_v61  ;;  %v600_v30 = vpop.f32.mrb[29].mxu0 }
 0x2bb   :  { %v1347_v31 = vpop.eup %1346  ;;  %v601_v32 = vadd.f32 %v1687_v61, %v600_v30 }
 0x2bc   :  { %v1349_v33 = vpop.eup %1348  ;;  %1139 = vmatprep.mubr.f32.mxu1 %v1347_v31 }
 0x2bd   :  { %1358 = vtanh.f32 %v601_v32  ;;  %v1097_v34 = vpop.f32.mrb[30].mxu0  ;;  %1140 = vmatmul.mubr.f32.vlgmr.msra.gmra.mrb[16].mxu1 %v1349_v33 }
 0x2be   :  { %1360 = vtanh.f32 %v606_v29  ;;  %v616_v35 = vadd.f32 %v1097_v34, %v1687_v61  ;;  %v610_v36 = vpop.f32.mrb[31].mxu0 }
 0x2bf   :  { %v1351_v37 = vpop.eup %1350  ;;  %v611_v38 = vadd.f32 %v1687_v61, %v610_v36 }
 0x2c0   :  { %v1353_v39 = vpop.eup %1352  ;;  %1142 = vmatprep.mubr.f32.mxu1 %v1351_v37 }
 0x2c1   :  { %1362 = vtanh.f32 %v611_v38  ;;  %1143 = vmatmul.mubr.f32.gmra.mrb[18].mxu1 %v1353_v39 }
 0x2c2   :  { %1364 = vtanh.f32 %v616_v35 }
 0x2c3   :  { %v1355_v40 = vpop.eup %1354 }
 0x2c4   :  { %v1357_v41 = vpop.eup %1356  ;;  %1145 = vmatprep.mubr.f32.mxu1 %v1355_v40 }
 0x2c5   :  { %1146 = vmatmul.mubr.f32.gmra.mrb[20].mxu1 %v1357_v41 }
 0x2c7   :  { %v1359_v42 = vpop.eup %1358 }
 0x2c8   :  { %v1361_v43 = vpop.eup %1360  ;;  %1148 = vmatprep.mubr.f32.mxu1 %v1359_v42 }
 0x2c9   :  { %1149 = vmatmul.mubr.f32.gmra.mrb[22].mxu1 %v1361_v43 }
 0x2cb   :  { %v1363_v44 = vpop.eup %1362 }
 0x2cc   :  { %v1365_v45 = vpop.eup %1364  ;;  %1151 = vmatprep.mubr.f32.mxu1 %v1363_v44 }
 0x2cd   :  { %1152 = vmatmul.mubr.f32.gmra.mrb[24].mxu1 %v1365_v45 }
 0x384   :  { %v1132_v47 = vpop.f32.mrb[32].mxu0 }
 0x385   :  { %v730_v48 = vadd.f32 %v1132_v47, %v843_v46  ;;  %v724_v49 = vpop.f32.mrb[33].mxu0 }
 0x386   :  { %v725_v50 = vadd.f32 %v843_v46, %v724_v49 }
 0x387   :  { %805 = vst.msk [vmem:[%s1781_s9 + $0x8] sm:$0xff] %vm803_vm1, %v730_v48 }
 0x388   :  { %804 = vst.msk [vmem:[%s1781_s9] sm:$0xff] %vm803_vm1, %v725_v50  ;;  %v1135_v51 = vpop.f32.mrb[34].mxu0 }
 0x389   :  { %v740_v52 = vadd.f32 %v1135_v51, %v843_v46  ;;  %v734_v53 = vpop.f32.mrb[35].mxu0 }
 0x38a   :  { %v735_v54 = vadd.f32 %v843_v46, %v734_v53 }
 0x38b   :  { %807 = vst.msk [vmem:[%s1781_s9 + $0x18] sm:$0xff] %vm803_vm1, %v740_v52 }
 0x38c   :  { %806 = vst.msk [vmem:[%s1781_s9 + $0x10] sm:$0xff] %vm803_vm1, %v735_v54  ;;  %v1138_v55 = vpop.f32.mrb[36].mxu0 }
 0x38d   :  { %v750_v56 = vadd.f32 %v1138_v55, %v843_v46  ;;  %v744_v57 = vpop.f32.mrb[37].mxu0 }
 0x38e   :  { %v745_v58 = vadd.f32 %v843_v46, %v744_v57 }
 0x38f   :  { %809 = vst.msk [vmem:[%s1781_s9 + $0x28] sm:$0xff] %vm803_vm1, %v750_v56 }
 0x390   :  { %808 = vst.msk [vmem:[%s1781_s9 + $0x20] sm:$0xff] %vm803_vm1, %v745_v58  ;;  %v1141_v59 = vpop.f32.mrb[16].mxu1 }
 0x391   :  { %v760_v60 = vadd.f32 %v1141_v59, %v843_v46  ;;  %v754_v61 = vpop.f32.mrb[17].mxu1 }
 0x392   :  { %v755_v62 = vadd.f32 %v843_v46, %v754_v61 }
 0x393   :  { %811 = vst.msk [vmem:[%s1781_s9 + $0x38] sm:$0xff] %vm803_vm1, %v760_v60 }
 0x394   :  { %810 = vst.msk [vmem:[%s1781_s9 + $0x30] sm:$0xff] %vm803_vm1, %v755_v62  ;;  %v1144_v63 = vpop.f32.mrb[18].mxu1 }
 0x395   :  { %v770_v0 = vadd.f32 %v1144_v63, %v843_v46  ;;  %v764_v1 = vpop.f32.mrb[19].mxu1 }
 0x396   :  { %v765_v2 = vadd.f32 %v843_v46, %v764_v1 }
 0x397   :  { %813 = vst.msk [vmem:[%s1781_s9 + $0x48] sm:$0xff] %vm803_vm1, %v770_v0 }
 0x398   :  { %812 = vst.msk [vmem:[%s1781_s9 + $0x40] sm:$0xff] %vm803_vm1, %v765_v2  ;;  %v1147_v3 = vpop.f32.mrb[20].mxu1 }
 0x399   :  { %v780_v4 = vadd.f32 %v1147_v3, %v843_v46  ;;  %v774_v5 = vpop.f32.mrb[21].mxu1 }
 0x39a   :  { %v775_v6 = vadd.f32 %v843_v46, %v774_v5 }
 0x39b   :  { %815 = vst.msk [vmem:[%s1781_s9 + $0x58] sm:$0xff] %vm803_vm1, %v780_v4 }
 0x39c   :  { %814 = vst.msk [vmem:[%s1781_s9 + $0x50] sm:$0xff] %vm803_vm1, %v775_v6  ;;  %v1150_v7 = vpop.f32.mrb[22].mxu1 }
 0x39d   :  { %v790_v8 = vadd.f32 %v1150_v7, %v843_v46  ;;  %v784_v9 = vpop.f32.mrb[23].mxu1 }
 0x39e   :  { %v785_v10 = vadd.f32 %v843_v46, %v784_v9 }
 0x39f   :  { %817 = vst.msk [vmem:[%s1781_s9 + $0x68] sm:$0xff] %vm803_vm1, %v790_v8 }
 0x3a0   :  { %816 = vst.msk [vmem:[%s1781_s9 + $0x60] sm:$0xff] %vm803_vm1, %v785_v10  ;;  %v1153_v11 = vpop.f32.mrb[24].mxu1 }
 0x3a1   :  { %v800_v12 = vadd.f32 %v1153_v11, %v843_v46  ;;  %v794_v13 = vpop.f32.mrb[25].mxu1 }
 0x3a2   :  { %v795_v14 = vadd.f32 %v843_v46, %v794_v13 }
 0x3a3   :  { %819 = vst.msk [vmem:[%s1781_s9 + $0x78] sm:$0xff] %vm803_vm1, %v800_v12 }
 0x3a4   :  { %818 = vst.msk [vmem:[%s1781_s9 + $0x70] sm:$0xff] %vm803_vm1, %v795_v14 }

</bundles_post_ra>
